<compile_context>
chip_gen: v5e
topology: v5e:2x2
jax: 0.10.0
libtpu: 0.0.40
codegen_flags: <defaults>
</compile_context>

<pallas_src>
import math
from functools import partial

import jax
import jax.numpy as jnp
from jax.experimental import pallas as pl
from jax.experimental.pallas import tpu as pltpu


# ----------------------------------------------------------------------------
# Kernel
# ----------------------------------------------------------------------------
def _deepar_fused_kernel(TC, Bblk, H, L, Xpad, Cpad, T_total, mm_dtype,
                         x_ref, idx_ref, w_ref, ep_ref, wh_ref, bh_ref,
                         h0_ref, c0_ref,
                         musig_ref, hout_ref, cout_ref,
                         pre_ref):
    """One (B-block, T-chunk) grid step of the stacked LSTM + Gaussian head.

    x_ref   : [1, 1, TC*Bblk, Xpad]  x rows of this chunk, t-major / b-minor
    idx_ref : [1, 1, TC*Bblk, 1]     int32 series ids for the same rows
    w_ref   : [R, 4H] packed, pre-transposed weights:
                rows [0, Xpad)                      W_x   (layer-0 x part)
                rows [Xpad, Xpad+H)                 W_hh0
                rows [.. + (l-1)*2H, +2H)           [W_ih_l ; W_hh_l], l>=1
                rows [.. , +8) per layer l>=1       b_ih_l + b_hh_l (row 0)
    ep_ref  : [Cpad, 4H]  emb_table @ W_emb.T + (b_ih0 + b_hh0)  (per class)
    wh_ref  : [L*H, 2]    fused mu/sigma head weights
    bh_ref  : [1, 2]      (b_mu, b_sigma)
    h0/c0   : [L, Bblk, H] initial state; hout/cout carry the state across
              T-chunks (output blocks are VMEM-resident along the T axis).
    pre_ref : VMEM scratch [TC*Bblk, 4H] for the precomputed layer-0 gates.
    """
    f32 = jnp.float32
    G = 4 * H
    M = TC * Bblk
    c_idx = pl.program_id(1)                       # T-chunk index (inner axis)
    need_mask = (T_total % TC) != 0                # static: padded tail steps?

    # ---- seed the state carry at the first T-chunk of this B-block ----------
    @pl.when(c_idx == 0)
    def _():
        hout_ref[...] = h0_ref[...]
        cout_ref[...] = c0_ref[...]

    # ---- hoist weight loads / casts (weights stay VMEM-resident) ------------
    w_x0 = w_ref[0:Xpad, :].astype(mm_dtype)                       # [Xpad,4H]
    w_hh0 = w_ref[Xpad:Xpad + H, :].astype(mm_dtype)               # [H,4H]
    off = Xpad + H
    w_cat = []
    for _l in range(1, L):
        w_cat.append(w_ref[off:off + 2 * H, :].astype(mm_dtype))   # [2H,4H]
        off += 2 * H
    bias_b = []
    for _l in range(1, L):                                         # [Bblk,4H]
        bias_b.append(jnp.broadcast_to(w_ref[off:off + 1, :], (Bblk, G)))
        off += 8
    emb_proj = ep_ref[...].astype(mm_dtype)                        # [Cpad,4H]
    w_head = wh_ref[...].astype(mm_dtype)                          # [L*H,2]

    # ---- precompute ALL layer-0 input gates of this chunk (off the serial
    #      critical path): x @ W_x0 + onehot(idx) @ (emb_proj + bias0) --------
    x_flat = x_ref[0, 0].astype(mm_dtype)                          # [M,Xpad]
    ids = idx_ref[0, 0]                                            # [M,1] i32
    iota = jax.lax.broadcasted_iota(jnp.int32, (M, Cpad), 1)
    onehot = jnp.where(iota == ids, 1.0, 0.0).astype(mm_dtype)     # [M,Cpad]
    pre_ref[...] = (jnp.dot(x_flat, w_x0, preferred_element_type=f32)
                    + jnp.dot(onehot, emb_proj, preferred_element_type=f32))

    h0 = tuple(hout_ref[l] for l in range(L))
    c0 = tuple(cout_ref[l] for l in range(L))

    def step(t, carry):
        hs, cs = carry
        row0 = pl.multiple_of(t * Bblk, 8)          # Bblk is a multiple of 8
        gin0 = pre_ref[pl.ds(row0, Bblk), :]        # [Bblk,4H] f32 (w/ bias0)
        new_h, new_c = [], []
        layer_in = None
        for l in range(L):
            if l == 0:
                gates = gin0 + jnp.dot(hs[0].astype(mm_dtype), w_hh0,
                                       preferred_element_type=f32)
            else:
                both = jnp.concatenate([layer_in, hs[l]], axis=1)  # [Bblk,2H]
                gates = (jnp.dot(both.astype(mm_dtype), w_cat[l - 1],
                                 preferred_element_type=f32)
                         + bias_b[l - 1])                          # [Bblk,4H]
            # one full-vreg sigmoid pass + one tanh pass, then slice (i,f,g,o)
            sig_all = jax.nn.sigmoid(gates)
            tanh_all = jnp.tanh(gates)
            i_g = sig_all[:, 0 * H:1 * H]
            f_g = sig_all[:, 1 * H:2 * H]
            g_g = tanh_all[:, 2 * H:3 * H]
            o_g = sig_all[:, 3 * H:4 * H]
            c_new = f_g * cs[l] + i_g * g_g
            h_new = o_g * jnp.tanh(c_new)
            if need_mask:                            # only traced if T padded
                valid = (c_idx * TC + t) < T_total
                c_new = jnp.where(valid, c_new, cs[l])
                h_new = jnp.where(valid, h_new, hs[l])
            new_h.append(h_new)
            new_c.append(c_new)
            layer_in = h_new
        return tuple(new_h), tuple(new_c)

    hT, cT = jax.lax.fori_loop(0, TC, step, (h0, c0), unroll=min(TC, 8))

    for l in range(L):
        hout_ref[l] = hT[l]
        cout_ref[l] = cT[l]

    # ---- Gaussian head, only on the final T-chunk ----------------------------
    @pl.when(c_idx == pl.num_programs(1) - 1)
    def _():
        hcat = jnp.concatenate(hT, axis=1)                         # [Bblk,L*H]
        head = (jnp.dot(hcat.astype(mm_dtype), w_head,
                        preferred_element_type=f32)
                + bh_ref[...])                                     # [Bblk,2]
        mu = head[:, 0:1]
        sg = jax.nn.softplus(head[:, 1:2])
        musig_ref[...] = jnp.concatenate([mu, sg], axis=1)


# ----------------------------------------------------------------------------
# Host-side packing (done once; pure plumbing)
# ----------------------------------------------------------------------------
def pack_params(raw, *, H, L, x_dim, num_class):
    """Pre-transpose / pack PyTorch-layout parameters for the kernel."""
    f32 = jnp.float32
    G = 4 * H
    Xpad = ((x_dim + 7) // 8) * 8
    Cpad = ((num_class + 7) // 8) * 8

    w_ih0 = raw["w_ih_list"][0]                                  # [4H, x_dim+E]
    b0 = raw["b_ih_list"][0] + raw["b_hh_list"][0]               # [4H]

    # layer-0: x part of W_ih (padded, transposed) + per-class embedding gate
    # projection with the layer-0 bias folded in.
    w_x0 = jnp.zeros((Xpad, G), f32).at[:x_dim, :].set(w_ih0[:, :x_dim].T)
    emb_proj = jnp.zeros((Cpad, G), f32).at[:num_class, :].set(
        raw["emb_table"] @ w_ih0[:, x_dim:].T + b0[None, :])

    blocks = [w_x0, raw["w_hh_list"][0].T]                       # [H,4H]
    for l in range(1, L):                                        # fused ih|hh
        blocks.append(jnp.concatenate(
            [raw["w_ih_list"][l].T, raw["w_hh_list"][l].T], axis=0))
    for l in range(1, L):                                        # biases l>=1
        b = (raw["b_ih_list"][l] + raw["b_hh_list"][l])[None, :]
        blocks.append(jnp.concatenate([b, jnp.zeros((7, G), f32)], axis=0))
    w_pack = jnp.concatenate(blocks, axis=0)                     # [R, 4H]

    # PyTorch head acts on hidden.permute(1,2,0).view(B, H*L): flat idx h*L+l.
    # Kernel concatenates layers (flat idx l*H+h) -> reorder accordingly.
    HL = H * L
    w_mu_r = raw["w_mu_flat"].reshape(H, L).T.reshape(HL)
    w_sig_r = raw["w_sig_flat"].reshape(H, L).T.reshape(HL)
    w_head = jnp.stack([w_mu_r, w_sig_r], axis=1).astype(f32)    # [L*H, 2]
    b_head = jnp.stack([raw["b_mu_s"], raw["b_sig_s"]]).astype(f32).reshape(1, 2)

    return {"w_pack": w_pack, "emb_proj": emb_proj, "w_head": w_head,
            "b_head": b_head, "Xpad": Xpad, "Cpad": Cpad}


# ----------------------------------------------------------------------------
# Wrapper (mirrors Net.forward)
# ----------------------------------------------------------------------------
def deepar_forward(x, idx, hidden, cell, packed, *,
                   matmul_dtype=jnp.bfloat16, t_chunk=16, b_block=None,
                   donate_state=False):
    """Returns (mu[B], sigma[B], hidden[L,B,H], cell[L,B,H]).

    matmul_dtype : MXU operand dtype (bf16 default; accumulation/elementwise
                   stay f32). Pass jnp.float32 for bit-accuracy-critical runs.
    t_chunk      : time steps per grid chunk (bounds VMEM, enables DMA/compute
                   overlap for long decode horizons).
    b_block      : batch rows per grid block (None -> auto; multiple blocks
                   let v7x's two TensorCores split the batch).
    donate_state : if True, the caller's hidden/cell HBM buffers are updated
                   in place (and must not be reused by the caller).
    """
    f32 = jnp.float32
    T, B, x_dim = x.shape
    L, _, H = hidden.shape
    G = 4 * H
    Xpad = packed["Xpad"]
    Cpad = packed["Cpad"]

    # ---- batch padding to a sublane multiple, block selection ---------------
    Bpad = ((B + 7) // 8) * 8
    if b_block is None:
        b_block = 128 if (Bpad > 128 and Bpad % 128 == 0) else Bpad
    if Bpad % b_block != 0:
        raise ValueError("b_block must divide the padded batch size")
    nB = Bpad // b_block

    TC = T if T <= t_chunk else t_chunk
    nC = (T + TC - 1) // TC
    Tpad = nC * TC
    M = TC * b_block

    # ---- input prep: pad, then pre-chunk so each grid block is one dense
    #      [TC*b_block, Xpad] slab (t-major, b-minor) -> no in-kernel reshapes.
    xp = jnp.zeros((Tpad, Bpad, Xpad), f32).at[:T, :B, :x_dim].set(x.astype(f32))
    idxp = jnp.zeros((Tpad, Bpad), jnp.int32).at[:T, :B].set(idx.astype(jnp.int32))
    x_blk = (xp.reshape(nC, TC, nB, b_block, Xpad)
               .transpose(0, 2, 1, 3, 4)
               .reshape(nC, nB, M, Xpad))
    idx_blk = (idxp.reshape(nC, TC, nB, b_block)
                   .transpose(0, 2, 1, 3)
                   .reshape(nC, nB, M, 1))

    if Bpad != B:
        pad_b = ((0, 0), (0, Bpad - B), (0, 0))
        hp = jnp.pad(hidden.astype(f32), pad_b)
        cp = jnp.pad(cell.astype(f32), pad_b)
    else:
        hp = (hidden if donate_state else jnp.copy(hidden)).astype(f32)
        cp = (cell if donate_state else jnp.copy(cell)).astype(f32)

    kernel = partial(_deepar_fused_kernel, TC, b_block, H, L, Xpad, Cpad, T,
                     matmul_dtype)

    grid = (nB, nC)          # B-blocks (parallel) outer, T-chunks (arbitrary)
    in_specs = [
        pl.BlockSpec((1, 1, M, Xpad), lambda bk, c: (c, bk, 0, 0)),   # x
        pl.BlockSpec((1, 1, M, 1), lambda bk, c: (c, bk, 0, 0)),      # idx
        pl.BlockSpec(packed["w_pack"].shape, lambda bk, c: (0, 0)),   # weights
        pl.BlockSpec(packed["emb_proj"].shape, lambda bk, c: (0, 0)), # emb proj
        pl.BlockSpec(packed["w_head"].shape, lambda bk, c: (0, 0)),   # head W
        pl.BlockSpec((1, 2), lambda bk, c: (0, 0)),                   # head b
        pl.BlockSpec((L, b_block, H), lambda bk, c: (0, bk, 0)),      # hidden
        pl.BlockSpec((L, b_block, H), lambda bk, c: (0, bk, 0)),      # cell
    ]
    out_specs = (
        pl.BlockSpec((b_block, 2), lambda bk, c: (bk, 0)),            # mu|sigma
        pl.BlockSpec((L, b_block, H), lambda bk, c: (0, bk, 0)),      # hidden
        pl.BlockSpec((L, b_block, H), lambda bk, c: (0, bk, 0)),      # cell
    )

    musig, h_out, c_out = pl.pallas_call(
        kernel,
        out_shape=(
            jax.ShapeDtypeStruct((Bpad, 2), f32),
            jax.ShapeDtypeStruct((L, Bpad, H), f32),
            jax.ShapeDtypeStruct((L, Bpad, H), f32),
        ),
        grid_spec=pltpu.PrefetchScalarGridSpec(
            num_scalar_prefetch=0,
            grid=grid,
            in_specs=in_specs,
            out_specs=out_specs,
            scratch_shapes=[pltpu.VMEM((M, G), f32)],
        ),
        compiler_params=pltpu.CompilerParams(
            dimension_semantics=("parallel", "arbitrary"),
            vmem_limit_bytes=32 * 1024 * 1024,
        ),
        # hidden -> h_out, cell -> c_out updated in place (buffers are
        # kernel-owned copies unless donate_state=True).
        input_output_aliases={6: 1, 7: 2},
    )(x_blk, idx_blk, packed["w_pack"], packed["emb_proj"], packed["w_head"],
      packed["b_head"], hp, cp)

    mu = musig[:B, 0]
    sigma = musig[:B, 1]
    if Bpad != B:
        h_out = h_out[:, :B, :]
        c_out = c_out[:, :B, :]
    return mu, sigma, h_out, c_out


# ----------------------------------------------------------------------------
# Pure-JAX reference replicating the PyTorch module math exactly
# ----------------------------------------------------------------------------
def reference_forward(x, idx, hidden, cell, raw):
    T, B, _ = x.shape
    L, _, H = hidden.shape
    h = [hidden[l] for l in range(L)]
    c = [cell[l] for l in range(L)]
    hi = jax.lax.Precision.HIGHEST
    for t in range(T):
        emb = raw["emb_table"][idx[t]]
        layer_in = jnp.concatenate([x[t], emb], axis=1)
        for l in range(L):
            gates = (jnp.dot(layer_in, raw["w_ih_list"][l].T, precision=hi)
                     + raw["b_ih_list"][l]
                     + jnp.dot(h[l], raw["w_hh_list"][l].T, precision=hi)
                     + raw["b_hh_list"][l])
            i = jax.nn.sigmoid(gates[:, :H])
            f = jax.nn.sigmoid(gates[:, H:2 * H])
            g = jnp.tanh(gates[:, 2 * H:3 * H])
            o = jax.nn.sigmoid(gates[:, 3 * H:])
            c[l] = f * c[l] + i * g
            h[l] = o * jnp.tanh(c[l])
            layer_in = h[l]
    h_out = jnp.stack(h)
    c_out = jnp.stack(c)
    hp = jnp.transpose(h_out, (1, 2, 0)).reshape(B, H * L)
    mu = jnp.dot(hp, raw["w_mu_flat"], precision=hi) + raw["b_mu_s"]
    sigma = jax.nn.softplus(jnp.dot(hp, raw["w_sig_flat"], precision=hi)
                            + raw["b_sig_s"])
    return mu, sigma, h_out, c_out


# ----------------------------------------------------------------------------
# Test
# ----------------------------------------------------------------------------
if __name__ == "__main__":
    H, L = 32, 2
    cov_dim, E, num_class = 4, 8, 5
    x_dim = 1 + cov_dim

    key = jax.random.PRNGKey(0)
    ks = list(jax.random.split(key, 48))
    pop = lambda: ks.pop(0)

    # ---- deterministic parameter init (PyTorch-style uniform bounds) --------
    emb_table = jax.random.normal(pop(), (num_class, E), jnp.float32)
    k_lstm = 1.0 / math.sqrt(H)
    w_ih_list, w_hh_list, b_ih_list, b_hh_list = [], [], [], []
    for l in range(L):
        in_dim = (x_dim + E) if l == 0 else H
        w_ih_list.append(jax.random.uniform(pop(), (4 * H, in_dim), jnp.float32,
                                            -k_lstm, k_lstm))
        w_hh_list.append(jax.random.uniform(pop(), (4 * H, H), jnp.float32,
                                            -k_lstm, k_lstm))
        b_ih_list.append(jax.random.uniform(pop(), (4 * H,), jnp.float32,
                                            -k_lstm, k_lstm))
        b_hh_list.append(jax.random.uniform(pop(), (4 * H,), jnp.float32,
                                            -k_lstm, k_lstm))
    k_lin = 1.0 / math.sqrt(H * L)
    w_mu_flat = jax.random.uniform(pop(), (H * L,), jnp.float32, -k_lin, k_lin)
    b_mu_s = jax.random.uniform(pop(), (), jnp.float32, -k_lin, k_lin)
    w_sig_flat = jax.random.uniform(pop(), (H * L,), jnp.float32, -k_lin, k_lin)
    b_sig_s = jax.random.uniform(pop(), (), jnp.float32, -k_lin, k_lin)

    raw = {
        "emb_table": emb_table,
        "w_ih_list": w_ih_list, "w_hh_list": w_hh_list,
        "b_ih_list": b_ih_list, "b_hh_list": b_hh_list,
        "w_mu_flat": w_mu_flat, "b_mu_s": b_mu_s,
        "w_sig_flat": w_sig_flat, "b_sig_s": b_sig_s,
    }
    packed = pack_params(raw, H=H, L=L, x_dim=x_dim, num_class=num_class)

    def run_case(T, B, matmul_dtype, t_chunk, b_block, atol, rtol, tag):
        x = jax.random.normal(pop(), (T, B, x_dim), jnp.float32)
        idx = jax.random.randint(pop(), (T, B), 0, num_class, jnp.int32)
        hidden = jax.random.normal(pop(), (L, B, H), jnp.float32) * 0.1
        cell = jax.random.normal(pop(), (L, B, H), jnp.float32) * 0.1

        mu_r, sig_r, h_r, c_r = reference_forward(x, idx, hidden, cell, raw)
        jax.block_until_ready((mu_r, sig_r, h_r, c_r))

        mu, sig, h_o, c_o = deepar_forward(
            x, idx, hidden, cell, packed,
            matmul_dtype=matmul_dtype, t_chunk=t_chunk, b_block=b_block)
        jax.block_until_ready((mu, sig, h_o, c_o))

        assert mu.shape == (B,) and sig.shape == (B,), tag
        assert h_o.shape == (L, B, H) and c_o.shape == (L, B, H), tag
        assert jnp.allclose(mu, mu_r, atol=atol, rtol=rtol), tag + " mu mismatch"
        assert jnp.allclose(sig, sig_r, atol=atol, rtol=rtol), tag + " sigma mismatch"
        assert jnp.allclose(h_o, h_r, atol=atol, rtol=rtol), tag + " hidden mismatch"
        assert jnp.allclose(c_o, c_r, atol=atol, rtol=rtol), tag + " cell mismatch"

    # Exact docstring shape (single decode step, tiny batch), f32 exact-ish.
    run_case(T=1, B=2, matmul_dtype=jnp.float32, t_chunk=16, b_block=None,
             atol=1e-3, rtol=1e-3, tag="T1_B2_f32")
    # Fused multi-step decode, single T-chunk, f32.
    run_case(T=8, B=8, matmul_dtype=jnp.float32, t_chunk=16, b_block=None,
             atol=1e-3, rtol=1e-3, tag="T8_B8_f32")
    # Same shape with the bf16 MXU-operand default (f32 accumulation/EUP).
    run_case(T=8, B=8, matmul_dtype=jnp.bfloat16, t_chunk=16, b_block=None,
             atol=8e-2, rtol=8e-2, tag="T8_B8_bf16")
    # Multi-chunk T grid with padded tail steps + padded batch rows, f32 exact.
    run_case(T=20, B=5, matmul_dtype=jnp.float32, t_chunk=8, b_block=None,
             atol=1e-3, rtol=1e-3, tag="T20_B5_chunked_f32")
    # 2-D grid: two B-blocks ("parallel" axis) x two T-chunks, bf16 default.
    run_case(T=16, B=16, matmul_dtype=jnp.bfloat16, t_chunk=8, b_block=8,
             atol=8e-2, rtol=8e-2, tag="T16_B16_bblk8_bf16")

    print("KERNEL_OK")
</pallas_src>

<mosaic_0001>
module attributes {stable_mosaic.version = 11 : i64} {
  func.func @_deepar_fused_kernel(%arg0: i32, %arg1: i32, %arg2: memref<1x1x8x8xf32, #tpu.memory_space<vmem>>, %arg3: memref<1x1x8x1xi32, #tpu.memory_space<vmem>>, %arg4: memref<112x128xf32, #tpu.memory_space<vmem>>, %arg5: memref<8x128xf32, #tpu.memory_space<vmem>>, %arg6: memref<64x2xf32, #tpu.memory_space<vmem>>, %arg7: memref<1x2xf32, #tpu.memory_space<vmem>>, %arg8: memref<2x8x32xf32, #tpu.memory_space<vmem>>, %arg9: memref<2x8x32xf32, #tpu.memory_space<vmem>>, %arg10: memref<8x2xf32, #tpu.memory_space<vmem>>, %arg11: memref<2x8x32xf32, #tpu.memory_space<vmem>>, %arg12: memref<2x8x32xf32, #tpu.memory_space<vmem>>, %arg13: memref<8x128xf32, #tpu.memory_space<vmem>>) attributes {dimension_semantics = [#tpu.dimension_semantics<parallel>, #tpu.dimension_semantics<arbitrary>], iteration_bounds = array<i64: 1, 1>, scalar_prefetch = 0 : i64, scratch_operands = 1 : i64, tpu.core_type = #tpu.core_type<tc>, window_params = [{transform_indices = @transform_0, window_bounds = array<i64: 1, 1, 8, 8>}, {transform_indices = @transform_1, window_bounds = array<i64: 1, 1, 8, 1>}, {pipeline_mode = #tpu.pipeline_mode<synchronous>, transform_indices = @transform_2, window_bounds = array<i64: 112, 128>}, {pipeline_mode = #tpu.pipeline_mode<synchronous>, transform_indices = @transform_3, window_bounds = array<i64: 8, 128>}, {pipeline_mode = #tpu.pipeline_mode<synchronous>, transform_indices = @transform_4, window_bounds = array<i64: 64, 2>}, {pipeline_mode = #tpu.pipeline_mode<synchronous>, transform_indices = @transform_5, window_bounds = array<i64: 1, 2>}, {transform_indices = @transform_6, window_bounds = array<i64: 2, 8, 32>}, {transform_indices = @transform_7, window_bounds = array<i64: 2, 8, 32>}, {transform_indices = @transform_8, window_bounds = array<i64: 8, 2>}, {transform_indices = @transform_9, window_bounds = array<i64: 2, 8, 32>}, {transform_indices = @transform_10, window_bounds = array<i64: 2, 8, 32>}]} {
    %c0_i32 = arith.constant 0 : i32
    %0 = arith.cmpi eq, %arg1, %c0_i32 : i32
    %1 = arith.extui %0 : i1 to i32
    %c0_i32_0 = arith.constant 0 : i32
    %2 = arith.cmpi ne, %1, %c0_i32_0 : i32
    scf.if %2 {
      %c0_53 = arith.constant 0 : index
      %c0_54 = arith.constant 0 : index
      %c0_55 = arith.constant 0 : index
      %87 = vector.load %arg8[%c0_53, %c0_54, %c0_55] : memref<2x8x32xf32, #tpu.memory_space<vmem>>, vector<2x8x32xf32>
      %c0_56 = arith.constant 0 : index
      %c0_57 = arith.constant 0 : index
      %c0_58 = arith.constant 0 : index
      %88 = vector.load %arg11[%c0_56, %c0_57, %c0_58] : memref<2x8x32xf32, #tpu.memory_space<vmem>>, vector<2x8x32xf32>
      tpu.vector_store %arg11[%c0_56, %c0_57, %c0_58], %87 {strides = array<i32>} : memref<2x8x32xf32, #tpu.memory_space<vmem>>, vector<2x8x32xf32>,
      %c0_59 = arith.constant 0 : index
      %c0_60 = arith.constant 0 : index
      %c0_61 = arith.constant 0 : index
      %89 = vector.load %arg9[%c0_59, %c0_60, %c0_61] : memref<2x8x32xf32, #tpu.memory_space<vmem>>, vector<2x8x32xf32>
      %c0_62 = arith.constant 0 : index
      %c0_63 = arith.constant 0 : index
      %c0_64 = arith.constant 0 : index
      %90 = vector.load %arg12[%c0_62, %c0_63, %c0_64] : memref<2x8x32xf32, #tpu.memory_space<vmem>>, vector<2x8x32xf32>
      tpu.vector_store %arg12[%c0_62, %c0_63, %c0_64], %89 {strides = array<i32>} : memref<2x8x32xf32, #tpu.memory_space<vmem>>, vector<2x8x32xf32>,
    } else {
    }
    %c0 = arith.constant 0 : index
    %c0_1 = arith.constant 0 : index
    %3 = vector.load %arg4[%c0, %c0_1] : memref<112x128xf32, #tpu.memory_space<vmem>>, vector<8x128xf32>
    %c8 = arith.constant 8 : index
    %c0_2 = arith.constant 0 : index
    %4 = vector.load %arg4[%c8, %c0_2] : memref<112x128xf32, #tpu.memory_space<vmem>>, vector<32x128xf32>
    %c40 = arith.constant 40 : index
    %c0_3 = arith.constant 0 : index
    %5 = vector.load %arg4[%c40, %c0_3] : memref<112x128xf32, #tpu.memory_space<vmem>>, vector<64x128xf32>
    %c104 = arith.constant 104 : index
    %c0_4 = arith.constant 0 : index
    %6 = vector.load %arg4[%c104, %c0_4] : memref<112x128xf32, #tpu.memory_space<vmem>>, vector<1x128xf32>
    %7 = vector.shape_cast %6 : vector<1x128xf32> to vector<1x128xf32>
    %8 = vector.broadcast %7 : vector<1x128xf32> to vector<8x128xf32>
    %c0_5 = arith.constant 0 : index
    %c0_6 = arith.constant 0 : index
    %9 = vector.load %arg5[%c0_5, %c0_6] : memref<8x128xf32, #tpu.memory_space<vmem>>, vector<8x128xf32>
    %c0_7 = arith.constant 0 : index
    %c0_8 = arith.constant 0 : index
    %10 = vector.load %arg6[%c0_7, %c0_8] : memref<64x2xf32, #tpu.memory_space<vmem>>, vector<64x2xf32>
    %c0_9 = arith.constant 0 : index
    %c0_10 = arith.constant 0 : index
    %c0_11 = arith.constant 0 : index
    %c0_12 = arith.constant 0 : index
    %11 = vector.load %arg2[%c0_9, %c0_10, %c0_11, %c0_12] : memref<1x1x8x8xf32, #tpu.memory_space<vmem>>, vector<1x1x8x8xf32>
    %12 = vector.shape_cast %11 : vector<1x1x8x8xf32> to vector<8x8xf32>
    %c0_13 = arith.constant 0 : index
    %c0_14 = arith.constant 0 : index
    %c0_15 = arith.constant 0 : index
    %c0_16 = arith.constant 0 : index
    %13 = vector.load %arg3[%c0_13, %c0_14, %c0_15, %c0_16] : memref<1x1x8x1xi32, #tpu.memory_space<vmem>>, vector<1x1x8x1xi32>
    %14 = vector.shape_cast %13 : vector<1x1x8x1xi32> to vector<8x1xi32>
    %15 = tpu.iota {dimensions = array<i32: 1>} : vector<8x8xi32>
    %16 = vector.broadcast %14 : vector<8x1xi32> to vector<8x8xi32>
    %17 = arith.cmpi eq, %15, %16 : vector<8x8xi32>
    %cst = arith.constant 1.000000e+00 : f32
    %cst_17 = arith.constant 0.000000e+00 : f32
    %18 = vector.broadcast %cst : f32 to vector<8x8xf32>
    %19 = vector.broadcast %cst_17 : f32 to vector<8x8xf32>
    %20 = arith.select %17, %18, %19 : vector<8x8xi1>, vector<8x8xf32>
    %cst_18 = arith.constant dense<0.000000e+00> : vector<8x128xf32>
    %21 = tpu.matmul %12, %3, %cst_18 {dimension_numbers = #tpu.dot_dimension_numbers<[1], [0], [0], [1], [0, 0, 1, 1], [], []>} : vector<8x8xf32>, vector<8x128xf32>, vector<8x128xf32> -> vector<8x128xf32>
    %cst_19 = arith.constant dense<0.000000e+00> : vector<8x128xf32>
    %22 = tpu.matmul %20, %9, %cst_19 {dimension_numbers = #tpu.dot_dimension_numbers<[1], [0], [0], [1], [0, 0, 1, 1], [], []>} : vector<8x8xf32>, vector<8x128xf32>, vector<8x128xf32> -> vector<8x128xf32>
    %23 = arith.addf %21, %22 : vector<8x128xf32>
    %c0_20 = arith.constant 0 : index
    %c0_21 = arith.constant 0 : index
    %24 = vector.load %arg13[%c0_20, %c0_21] : memref<8x128xf32, #tpu.memory_space<vmem>>, vector<8x128xf32>
    tpu.vector_store %arg13[%c0_20, %c0_21], %23 {strides = array<i32>} : memref<8x128xf32, #tpu.memory_space<vmem>>, vector<8x128xf32>,
    %c0_22 = arith.constant 0 : index
    %c0_23 = arith.constant 0 : index
    %c0_24 = arith.constant 0 : index
    %25 = vector.load %arg11[%c0_22, %c0_23, %c0_24] : memref<2x8x32xf32, #tpu.memory_space<vmem>>, vector<1x8x32xf32>
    %26 = vector.shape_cast %25 : vector<1x8x32xf32> to vector<8x32xf32>
    %c1 = arith.constant 1 : index
    %c0_25 = arith.constant 0 : index
    %c0_26 = arith.constant 0 : index
    %27 = vector.load %arg11[%c1, %c0_25, %c0_26] : memref<2x8x32xf32, #tpu.memory_space<vmem>>, vector<1x8x32xf32>
    %28 = vector.shape_cast %27 : vector<1x8x32xf32> to vector<8x32xf32>
    %c0_27 = arith.constant 0 : index
    %c0_28 = arith.constant 0 : index
    %c0_29 = arith.constant 0 : index
    %29 = vector.load %arg12[%c0_27, %c0_28, %c0_29] : memref<2x8x32xf32, #tpu.memory_space<vmem>>, vector<1x8x32xf32>
    %30 = vector.shape_cast %29 : vector<1x8x32xf32> to vector<8x32xf32>
    %c1_30 = arith.constant 1 : index
    %c0_31 = arith.constant 0 : index
    %c0_32 = arith.constant 0 : index
    %31 = vector.load %arg12[%c1_30, %c0_31, %c0_32] : memref<2x8x32xf32, #tpu.memory_space<vmem>>, vector<1x8x32xf32>
    %32 = vector.shape_cast %31 : vector<1x8x32xf32> to vector<8x32xf32>
    %c0_i32_33 = arith.constant 0 : i32
    %c8_i32 = arith.constant 8 : i32
    %33 = arith.muli %c0_i32_33, %c8_i32 : i32
    %34 = tpu.assume_multiple %33, 8 : i32
    %35 = arith.index_cast %34 : i32 to index
    %c0_34 = arith.constant 0 : index
    %36 = vector.load %arg13[%35, %c0_34] : memref<8x128xf32, #tpu.memory_space<vmem>>, vector<8x128xf32>
    %cst_35 = arith.constant dense<0.000000e+00> : vector<8x128xf32>
    %37 = tpu.matmul %26, %4, %cst_35 {dimension_numbers = #tpu.dot_dimension_numbers<[1], [0], [0], [1], [0, 0, 1, 1], [], []>} : vector<8x32xf32>, vector<32x128xf32>, vector<8x128xf32> -> vector<8x128xf32>
    %38 = arith.addf %36, %37 : vector<8x128xf32>
    %39 = arith.negf %38 : vector<8x128xf32>
    %40 = math.exp %39 : vector<8x128xf32>
    %cst_36 = arith.constant 1.000000e+00 : f32
    %41 = vector.broadcast %cst_36 : f32 to vector<8x128xf32>
    %42 = arith.addf %41, %40 : vector<8x128xf32>
    %43 = arith.divf %41, %42 : vector<8x128xf32>
    %44 = math.tanh %38 : vector<8x128xf32>
    %45 = vector.extract_strided_slice %43 {offsets = [0, 0], sizes = [8, 32], strides = [1, 1]} : vector<8x128xf32> to vector<8x32xf32>
    %46 = vector.extract_strided_slice %43 {offsets = [0, 32], sizes = [8, 32], strides = [1, 1]} : vector<8x128xf32> to vector<8x32xf32>
    %47 = vector.extract_strided_slice %44 {offsets = [0, 64], sizes = [8, 32], strides = [1, 1]} : vector<8x128xf32> to vector<8x32xf32>
    %48 = vector.extract_strided_slice %43 {offsets = [0, 96], sizes = [8, 32], strides = [1, 1]} : vector<8x128xf32> to vector<8x32xf32>
    %49 = arith.mulf %46, %30 : vector<8x32xf32>
    %50 = arith.mulf %45, %47 : vector<8x32xf32>
    %51 = arith.addf %49, %50 : vector<8x32xf32>
    %52 = math.tanh %51 : vector<8x32xf32>
    %53 = arith.mulf %48, %52 : vector<8x32xf32>
    %54 = tpu.concatenate %53, %28 in 1 : vector<8x32xf32>, vector<8x32xf32> -> vector<8x64xf32>
    %cst_37 = arith.constant dense<0.000000e+00> : vector<8x128xf32>
    %55 = tpu.matmul %54, %5, %cst_37 {dimension_numbers = #tpu.dot_dimension_numbers<[1], [0], [0], [1], [0, 0, 1, 1], [], []>} : vector<8x64xf32>, vector<64x128xf32>, vector<8x128xf32> -> vector<8x128xf32>
    %56 = arith.addf %55, %8 : vector<8x128xf32>
    %57 = arith.negf %56 : vector<8x128xf32>
    %58 = math.exp %57 : vector<8x128xf32>
    %cst_38 = arith.constant 1.000000e+00 : f32
    %59 = vector.broadcast %cst_38 : f32 to vector<8x128xf32>
    %60 = arith.addf %59, %58 : vector<8x128xf32>
    %61 = arith.divf %59, %60 : vector<8x128xf32>
    %62 = math.tanh %56 : vector<8x128xf32>
    %63 = vector.extract_strided_slice %61 {offsets = [0, 0], sizes = [8, 32], strides = [1, 1]} : vector<8x128xf32> to vector<8x32xf32>
    %64 = vector.extract_strided_slice %61 {offsets = [0, 32], sizes = [8, 32], strides = [1, 1]} : vector<8x128xf32> to vector<8x32xf32>
    %65 = vector.extract_strided_slice %62 {offsets = [0, 64], sizes = [8, 32], strides = [1, 1]} : vector<8x128xf32> to vector<8x32xf32>
    %66 = vector.extract_strided_slice %61 {offsets = [0, 96], sizes = [8, 32], strides = [1, 1]} : vector<8x128xf32> to vector<8x32xf32>
    %67 = arith.mulf %64, %32 : vector<8x32xf32>
    %68 = arith.mulf %63, %65 : vector<8x32xf32>
    %69 = arith.addf %67, %68 : vector<8x32xf32>
    %70 = math.tanh %69 : vector<8x32xf32>
    %71 = arith.mulf %66, %70 : vector<8x32xf32>
    %c1_i32 = arith.constant 1 : i32
    %c0_39 = arith.constant 0 : index
    %c0_40 = arith.constant 0 : index
    %c0_41 = arith.constant 0 : index
    %72 = vector.load %arg11[%c0_39, %c0_40, %c0_41] : memref<2x8x32xf32, #tpu.memory_space<vmem>>, vector<1x8x32xf32>
    %73 = vector.shape_cast %72 : vector<1x8x32xf32> to vector<8x32xf32>
    %74 = vector.shape_cast %53 : vector<8x32xf32> to vector<1x8x32xf32>
    tpu.vector_store %arg11[%c0_39, %c0_40, %c0_41], %74 {strides = array<i32>} : memref<2x8x32xf32, #tpu.memory_space<vmem>>, vector<1x8x32xf32>,
    %c0_42 = arith.constant 0 : index
    %c0_43 = arith.constant 0 : index
    %c0_44 = arith.constant 0 : index
    %75 = vector.load %arg12[%c0_42, %c0_43, %c0_44] : memref<2x8x32xf32, #tpu.memory_space<vmem>>, vector<1x8x32xf32>
    %76 = vector.shape_cast %75 : vector<1x8x32xf32> to vector<8x32xf32>
    %77 = vector.shape_cast %51 : vector<8x32xf32> to vector<1x8x32xf32>
    tpu.vector_store %arg12[%c0_42, %c0_43, %c0_44], %77 {strides = array<i32>} : memref<2x8x32xf32, #tpu.memory_space<vmem>>, vector<1x8x32xf32>,
    %c1_45 = arith.constant 1 : index
    %c0_46 = arith.constant 0 : index
    %c0_47 = arith.constant 0 : index
    %78 = vector.load %arg11[%c1_45, %c0_46, %c0_47] : memref<2x8x32xf32, #tpu.memory_space<vmem>>, vector<1x8x32xf32>
    %79 = vector.shape_cast %78 : vector<1x8x32xf32> to vector<8x32xf32>
    %80 = vector.shape_cast %71 : vector<8x32xf32> to vector<1x8x32xf32>
    tpu.vector_store %arg11[%c1_45, %c0_46, %c0_47], %80 {strides = array<i32>} : memref<2x8x32xf32, #tpu.memory_space<vmem>>, vector<1x8x32xf32>,
    %c1_48 = arith.constant 1 : index
    %c0_49 = arith.constant 0 : index
    %c0_50 = arith.constant 0 : index
    %81 = vector.load %arg12[%c1_48, %c0_49, %c0_50] : memref<2x8x32xf32, #tpu.memory_space<vmem>>, vector<1x8x32xf32>
    %82 = vector.shape_cast %81 : vector<1x8x32xf32> to vector<8x32xf32>
    %83 = vector.shape_cast %69 : vector<8x32xf32> to vector<1x8x32xf32>
    tpu.vector_store %arg12[%c1_48, %c0_49, %c0_50], %83 {strides = array<i32>} : memref<2x8x32xf32, #tpu.memory_space<vmem>>, vector<1x8x32xf32>,
    %c0_i32_51 = arith.constant 0 : i32
    %84 = arith.cmpi eq, %arg1, %c0_i32_51 : i32
    %85 = arith.extui %84 : i1 to i32
    %c0_i32_52 = arith.constant 0 : i32
    %86 = arith.cmpi ne, %85, %c0_i32_52 : i32
    scf.if %86 {
      %87 = tpu.concatenate %53, %71 in 1 : vector<8x32xf32>, vector<8x32xf32> -> vector<8x64xf32>
      %cst_53 = arith.constant dense<0.000000e+00> : vector<8x2xf32>
      %88 = tpu.matmul %87, %10, %cst_53 {dimension_numbers = #tpu.dot_dimension_numbers<[1], [0], [0], [1], [0, 0, 1, 1], [], []>} : vector<8x64xf32>, vector<64x2xf32>, vector<8x2xf32> -> vector<8x2xf32>
      %c0_54 = arith.constant 0 : index
      %c0_55 = arith.constant 0 : index
      %89 = vector.load %arg7[%c0_54, %c0_55] : memref<1x2xf32, #tpu.memory_space<vmem>>, vector<1x2xf32>
      %90 = vector.broadcast %89 : vector<1x2xf32> to vector<8x2xf32>
      %91 = arith.addf %88, %90 : vector<8x2xf32>
      %92 = vector.extract_strided_slice %91 {offsets = [0, 0], sizes = [8, 1], strides = [1, 1]} : vector<8x2xf32> to vector<8x1xf32>
      %93 = vector.extract_strided_slice %91 {offsets = [0, 1], sizes = [8, 1], strides = [1, 1]} : vector<8x2xf32> to vector<8x1xf32>
      %cst_56 = arith.constant 0.000000e+00 : f32
      %94 = vector.broadcast %cst_56 : f32 to vector<8x1xf32>
      %95 = arith.maximumf %93, %94 : vector<8x1xf32>
      %96 = vector.broadcast %cst_56 : f32 to vector<8x1xf32>
      %97 = arith.subf %93, %96 : vector<8x1xf32>
      %98 = arith.cmpf one, %97, %97 : vector<8x1xf32>
      %99 = vector.broadcast %cst_56 : f32 to vector<8x1xf32>
      %100 = arith.addf %93, %99 : vector<8x1xf32>
      %101 = math.absf %97 : vector<8x1xf32>
      %cst_57 = arith.constant 0.000000e+00 : f32
      %102 = vector.broadcast %cst_57 : f32 to vector<8x1xf32>
      %103 = arith.subf %102, %101 : vector<8x1xf32>
      %104 = math.exp %103 : vector<8x1xf32>
      %105 = math.log1p %104 : vector<8x1xf32>
      %106 = arith.addf %95, %105 : vector<8x1xf32>
      %107 = arith.select %98, %100, %106 : vector<8x1xi1>, vector<8x1xf32>
      %108 = tpu.concatenate %92, %107 in 1 : vector<8x1xf32>, vector<8x1xf32> -> vector<8x2xf32>
      %c0_58 = arith.constant 0 : index
      %c0_59 = arith.constant 0 : index
      %109 = vector.load %arg10[%c0_58, %c0_59] : memref<8x2xf32, #tpu.memory_space<vmem>>, vector<8x2xf32>
      tpu.vector_store %arg10[%c0_58, %c0_59], %108 {strides = array<i32>} : memref<8x2xf32, #tpu.memory_space<vmem>>, vector<8x2xf32>,
    } else {
    }
    return
  }
  func.func @transform_0(%arg0: i32, %arg1: i32) -> (i32, i32, i32, i32) {
    %c0_i32 = arith.constant 0 : i32
    %c0_i32_0 = arith.constant 0 : i32
    %c0_i32_1 = arith.constant 0 : i32
    return %arg1, %arg0, %c0_i32, %c0_i32_0 : i32, i32, i32, i32
  }
  func.func @transform_1(%arg0: i32, %arg1: i32) -> (i32, i32, i32, i32) {
    %c0_i32 = arith.constant 0 : i32
    %c0_i32_0 = arith.constant 0 : i32
    %c0_i32_1 = arith.constant 0 : i32
    return %arg1, %arg0, %c0_i32, %c0_i32_0 : i32, i32, i32, i32
  }
  func.func @transform_2(%arg0: i32, %arg1: i32) -> (i32, i32) {
    %c0_i32 = arith.constant 0 : i32
    %c0_i32_0 = arith.constant 0 : i32
    %c0_i32_1 = arith.constant 0 : i32
    return %c0_i32, %c0_i32_0 : i32, i32
  }
  func.func @transform_3(%arg0: i32, %arg1: i32) -> (i32, i32) {
    %c0_i32 = arith.constant 0 : i32
    %c0_i32_0 = arith.constant 0 : i32
    %c0_i32_1 = arith.constant 0 : i32
    return %c0_i32, %c0_i32_0 : i32, i32
  }
  func.func @transform_4(%arg0: i32, %arg1: i32) -> (i32, i32) {
    %c0_i32 = arith.constant 0 : i32
    %c0_i32_0 = arith.constant 0 : i32
    %c0_i32_1 = arith.constant 0 : i32
    return %c0_i32, %c0_i32_0 : i32, i32
  }
  func.func @transform_5(%arg0: i32, %arg1: i32) -> (i32, i32) {
    %c0_i32 = arith.constant 0 : i32
    %c0_i32_0 = arith.constant 0 : i32
    %c0_i32_1 = arith.constant 0 : i32
    return %c0_i32, %c0_i32_0 : i32, i32
  }
  func.func @transform_6(%arg0: i32, %arg1: i32) -> (i32, i32, i32) {
    %c0_i32 = arith.constant 0 : i32
    %c0_i32_0 = arith.constant 0 : i32
    %c0_i32_1 = arith.constant 0 : i32
    return %c0_i32, %arg0, %c0_i32_0 : i32, i32, i32
  }
  func.func @transform_7(%arg0: i32, %arg1: i32) -> (i32, i32, i32) {
    %c0_i32 = arith.constant 0 : i32
    %c0_i32_0 = arith.constant 0 : i32
    %c0_i32_1 = arith.constant 0 : i32
    return %c0_i32, %arg0, %c0_i32_0 : i32, i32, i32
  }
  func.func @transform_8(%arg0: i32, %arg1: i32) -> (i32, i32) {
    %c0_i32 = arith.constant 0 : i32
    %c0_i32_0 = arith.constant 0 : i32
    return %arg0, %c0_i32 : i32, i32
  }
  func.func @transform_9(%arg0: i32, %arg1: i32) -> (i32, i32, i32) {
    %c0_i32 = arith.constant 0 : i32
    %c0_i32_0 = arith.constant 0 : i32
    %c0_i32_1 = arith.constant 0 : i32
    return %c0_i32, %arg0, %c0_i32_0 : i32, i32, i32
  }
  func.func @transform_10(%arg0: i32, %arg1: i32) -> (i32, i32, i32) {
    %c0_i32 = arith.constant 0 : i32
    %c0_i32_0 = arith.constant 0 : i32
    %c0_i32_1 = arith.constant 0 : i32
    return %c0_i32, %arg0, %c0_i32_0 : i32, i32, i32
  }
}

</mosaic_0001>

<bundles_post_ra>
// kernel: tpu_custom_call.1
= control target key start
LH: loop header
LB: loop body
LE: loop exit
PB: predicated region body
PF: predicated region fallthrough
CT: control target
= control target key end

     0   :  { %16 = vsyncpa [#allocation4], 0  ;;  %s442_s16 = smov [#allocation3]   ;;  %s443_s18 = smov 128   ;;  %s625_s0 = inlined_call_operand.vmem [shape: f32[1,1,8,8], index: 0, kind: input, shape index: {}]   ;;  %s626_s1 = inlined_call_operand.vmem [shape: s32[1,1,8,1], index: 1, kind: input, shape index: {}]   ;;  %s627_s2 = inlined_call_operand.hbm [shape: f32[112,128], index: 2, kind: input, shape index: {}]   ;;  %s628_s3 = inlined_call_operand.vmem [shape: f32[8,128], index: 3, kind: input, shape index: {}]   ;;  %s629_s4 = inlined_call_operand.vmem [shape: f32[64,2], index: 4, kind: input, shape index: {}]   ;;  %s630_s5 = inlined_call_operand.vmem [shape: f32[1,2], index: 5, kind: input, shape index: {}]   ;;  %s631_s6 = inlined_call_operand.vmem [shape: f32[2,8,32], index: 6, kind: input, shape index: {}, may-alias: {6,9}]   ;;  %s632_s7 = inlined_call_operand.vmem [shape: f32[2,8,32], index: 7, kind: input, shape index: {}, may-alias: {7,10}]   ;;  %s633_s8 = inlined_call_operand.vmem [shape: f32[8,2], index: 8, kind: output, shape index: {0}]   ;;  %s634_s9 = inlined_call_operand.vmem [shape: f32[2,8,32], index: 9, kind: output, shape index: {1}, may-alias: {6,9}]   ;;  %s635_s10 = inlined_call_operand.vmem [shape: f32[2,8,32], index: 10, kind: output, shape index: {2}, may-alias: {7,10}]  }
   0x1   :  { %s25_s15 = sshll.u32 %s627_s2, 4  ;;  %s27_s17 = sshll.u32 %s442_s16, 4  ;;  %s26_s15 = int_to_ptr.hbm [resolvable:$true] %s25_s15  ;;  %s28_s17 = int_to_ptr.vmem [resolvable:$true] %s27_s17 }
   0x2   :  { %s444_s19 = smov 8  }
   0x3   :  { %33 = dma.hbm_to_vmem [thread:$0]  %s26_s15, 1792, %s28_s17, [#allocation4], %s443_s18, %s443_s18, %s444_s19  }
   0x4   :  { %440 = dma.done.wait [#allocation4], 1792  }
   0x5   :  { %441 = vsyncadd [#allocation4], 4294965504  ;;  %v445_v0 = vmov 0   ;;  %v86_v1 = vld [vmem:[%s626_s1] sm:$0xff]  ;;  %vm54_vm0 = vcmask 261120   ;;  %v64_v5 = vld [vmem:[#allocation3 + $0x18] sm:$0xff]  ;;  %v87_v12 = vlaneseq }
   0x6   :  { %393 = vset.pattern.permute.xlu0 %v445_v0  ;;  %v52_v2 = vld [vmem:[%s631_s6] sm:$0xff]  ;;  %v63_v7 = vld [vmem:[#allocation3 + $0x10] sm:$0xff]  ;;  %v62_v8 = vld [vmem:[#allocation3 + $0x8] sm:$0xff]  ;;  %s446_s13 = smov 32   ;;  %vm94_vm1 = vcmask 64512   ;;  %v447_v15 = vmov 0.0  }
   0x7   :  { %90 = vperm.xlu0 %393, %v86_v1   ;;  %v65_v3 = vld [vmem:[#allocation3 + $0x20] sm:$0xff]  ;;  %55 = vst.msk [vmem:[%s634_s9] sm:$0xff] %vm54_vm0, %v52_v2  ;;  %v88_v13 = vand.u32 127, %v87_v12  ;;  %s448_s16 = smov 64   ;;  %v72_v47 = vld [vmem:[#allocation3 + $0x58] sm:$0xff]  ;;  %v71_v48 = vld [vmem:[#allocation3 + $0x50] sm:$0xff] }
   0x8   :  { %165 = vmatpush.msra.mxu2 %v65_v3  ;;  %v76_v4 = vld [vmem:[%s628_s3] sm:$0xff]  ;;  %v70_v49 = vld [vmem:[#allocation3 + $0x48] sm:$0xff]  ;;  %v68_v51 = vld [vmem:[#allocation3 + $0x38] sm:$0xff]  ;;  %vm224_vm7 = vcmask 523264   ;;  %vm357_vm13 = vcmask 7168   ;;  %vm359_vm15 = vcmask 15360  }
   0x9   :  { %113 = vmatpush.msra.mxu1 %v76_v4  ;;  %v61_v6 = vld [vmem:[#allocation3] sm:$0xff]  ;;  %v67_v52 = vld [vmem:[#allocation3 + $0x30] sm:$0xff]  ;;  %v66_v55 = vld [vmem:[#allocation3 + $0x28] sm:$0xff] }
   0xa   :  { %166 = vmatpush.msra.mxu2 %v64_v5  ;;  %v57_v10 = vld [vmem:[%s632_s7] sm:$0xff]  ;;  %v394_v61 = vld [vmem:[#allocation3 + $0x68] ss:$0 sm:$0xff] }
   0xb   :  { %136 = vmatpush.msrb.mxu1 %v61_v6  ;;  %59 = vst.msk [vmem:[%s635_s10] sm:$0xff] %vm54_vm0, %v57_v10  ;;  %v85_v17 = vld [vmem:[%s625_s0] sm:$0xff] }
   0xc   :  { %167 = vmatpush.msra.mxu2 %v63_v7  ;;  %v73_v46 = vld [vmem:[#allocation3 + $0x60] sm:$0xff] }
   0xd   :  { %236 = vmatpush.msra.mxu3 %v73_v46  ;;  %v69_v50 = vld [vmem:[#allocation3 + $0x40] sm:$0xff] }
   0xe   :  { %168 = vmatpush.msra.mxu2 %v62_v8  ;;  %v142_v9 = vld [vmem:[%s634_s9] sm:$0xff]  ;;  %v53_v39 = vld [vmem:[%s631_s6 + $0x8] sm:$0xff] }
   0xf   :  { %378 = vmatmul.msk.f32.vlgmr.msra.gmra.mxu2 %vm54_vm0, %v142_v9  ;;  %56 = vst.msk [vmem:[%s634_s9 + $0x8] sm:$0xff] %vm54_vm0, %v53_v39  ;;  %237 = vmatpush.msra.mxu3 %v72_v47 }
  0x11   :  { %238 = vmatpush.msra.mxu3 %v71_v48 }
  0x12   :  { %v145_v11 = vld [vmem:[%s635_s10] sm:$0xff]  ;;  %v58_v56 = vld [vmem:[%s632_s7 + $0x8] sm:$0xff]  ;;  %s449_s7 = smov 96  }
  0x13   :  { %195 = vrot.lane.b32.xlu1 %v145_v11, %s446_s13  ;;  %239 = vmatpush.msra.mxu3 %v70_v49  ;;  %60 = vst.msk [vmem:[%s635_s10 + $0x8] sm:$0xff] %vm54_vm0, %v58_v56 }
  0x15   :  { %240 = vmatpush.msra.mxu3 %v69_v50 }
  0x16   :  { %v376_v40 = vld [vmem:[%s634_s9 + $0x8] sm:$0xff] }
  0x17   :  { %241 = vmatpush.msra.mxu3 %v68_v51 }
  0x19   :  { %242 = vmatpush.msra.mxu3 %v67_v52 }
  0x1a   :  { %v377_v57 = vld [vmem:[%s635_s10 + $0x8] sm:$0xff] }
  0x1b   :  { %243 = vmatpush.msra.mxu3 %v66_v55 }
  0x79   :  { %v91_v14 = vpop.permute.xlu0 %90 }
  0x7a   :  { %vm92_vm2 = vcmp.eq.s32.totalorder %v88_v13, %v91_v14 }
  0x7b   :  { %v93_v16 = vsel %vm92_vm2, 1.0, %v447_v15 }
  0x7c   :  { %374 = vmatmul.msk.f32.vlgmr.msra.gmra.mxu1 %vm94_vm1, %v93_v16 }
  0x84   :  { %375 = vmatmul.msk.f32.vlgmr.msrb.gmra.mxu1 %vm94_vm1, %v85_v17 }
  0x85   :  { %v196_v41 = vpop.permute.xlu1 %195 }
  0x92   :  { %v170_v20 = vpop.f32.mrf.mxu2 }
  0xf9   :  { %v115_v18 = vpop.f32.mrf.mxu1 }
 0x101   :  { %v138_v19 = vpop.f32.mrf.mxu1 }
 0x102   :  { %v139_v21 = vadd.f32 %v138_v19, %v115_v18 }
 0x104   :  { %v173_v22 = vadd.f32 %v170_v20, %v139_v21 }
 0x106   :  { %396 = vtanh.f32 %v173_v22  ;;  %v379_v24 = vmul.f32 -1.442695, %v173_v22  ;;  %v84_v22 = vld [vmem:[%s629_s4 + $0x38] sm:$0xff] }
 0x107   :  { %327 = vmatpush.msra.mxu0 %v84_v22 }
 0x108   :  { %398 = vpow2.f32 %v379_v24  ;;  %v82_v24 = vld [vmem:[%s629_s4 + $0x28] sm:$0xff] }
 0x10c   :  { %v397_v23 = vpop.eup %396 }
 0x10d   :  { %200 = vrot.lane.b32.xlu0 %v397_v23, %s448_s16  ;;  %v83_v23 = vld [vmem:[%s629_s4 + $0x30] sm:$0xff] }
 0x10e   :  { %v399_v25 = vpop.eup %398  ;;  %328 = vmatpush.msra.mxu0 %v83_v23 }
 0x10f   :  { %v177_v26 = vadd.f32 1.0, %v399_v25  ;;  %v81_v25 = vld [vmem:[%s629_s4 + $0x20] sm:$0xff] }
 0x110   :  { %329 = vmatpush.msra.mxu0 %v82_v24 }
 0x111   :  { %400 = vrcp.f32 %v177_v26  ;;  %v189_v32 = vand.u32 2147483648, %v177_v26  ;;  %vm183_vm4 = vweird.f32 %v177_v26  ;;  %v187_v33 = vand.u32 2147483647, %v177_v26 }
 0x112   :  { %330 = vmatpush.msra.mxu0 %v81_v25 }
 0x113   :  { %v190_v35 = vor.u32 1.1754944e-38, %v189_v32  ;;  %vm188_vm6 = vcmp.eq.f32.partialorder %v187_v33, 8.507059e+37 }
 0x115   :  { %220 = vrot.lane.b32.xlu0 %v376_v40, %s446_s13 }
 0x117   :  { %v401_v27 = vpop.eup %400 }
 0x118   :  { %v179_v28 = vmul.f32 %v401_v27, %v177_v26  ;;  %vm184_vm3 = vweird.f32 %v401_v27  ;;  %v80_v26 = vld [vmem:[%s629_s4 + $0x18] sm:$0xff] }
 0x119   :  { %vm185_vm5 = vmor %vm183_vm4, %vm184_vm3  ;;  %331 = vmatpush.msra.mxu0 %v80_v26 }
 0x11a   :  { %v180_v29 = vsub.f32 1.0, %v179_v28  ;;  %v78_v28 = vld [vmem:[%s629_s4 + $0x8] sm:$0xff] }
 0x11c   :  { %v181_v30 = vmul.f32 %v401_v27, %v180_v29 }
 0x11e   :  { %v182_v31 = vadd.f32 %v401_v27, %v181_v30 }
 0x120   :  { %v186_v34 = vsel %vm185_vm5, %v401_v27, %v182_v31  ;;  %v79_v27 = vld [vmem:[%s629_s4 + $0x10] sm:$0xff]  ;;  %v77_v31 = vld [vmem:[%s629_s4] sm:$0xff] }
 0x121   :  { %v191_v36 = vsel %vm188_vm6, %v190_v35, %v186_v34  ;;  %332 = vmatpush.msra.mxu0 %v79_v27 }
 0x122   :  { %v198_v42 = vmul.f32 %v196_v41, %v191_v36 }
 0x123   :  { %333 = vmatpush.msra.mxu0 %v78_v28 }
 0x125   :  { %334 = vmatpush.msra.mxu0 %v77_v31 }
 0x17f   :  { %v201_v37 = vpop.permute.xlu0 %200 }
 0x180   :  { %v203_v38 = vmul.f32 %v201_v37, %v191_v36 }
 0x182   :  { %205 = vrot.lane.b32.xlu1 %v203_v38, %s446_s13 }
 0x187   :  { %v221_v58 = vpop.permute.xlu0 %220 }
 0x1f4   :  { %v206_v43 = vpop.permute.xlu1 %205 }
 0x1f5   :  { %v208_v44 = vadd.f32 %v206_v43, %v198_v42 }
 0x1f7   :  { %402 = vtanh.f32 %v208_v44 }
 0x1fd   :  { %v403_v45 = vpop.eup %402 }
 0x1fe   :  { %211 = vrot.lane.b32.xlu2 %v403_v45, %s448_s16 }
 0x258   :  { %v212_v53 = vpop.permute.xlu2 %211 }
 0x259   :  { %v214_v54 = vmul.f32 %v212_v53, %v191_v36  ;;  %v395_v36 = vld [vmem:[%s630_s5] ss:$0 sm:$0xff] }
 0x25b   :  { %216 = vrot.lane.b32.xlu2 %v214_v54, %s446_s13 }
 0x263   :  { %269 = vrot.lane.b32.xlu2 %v377_v57, %s446_s13 }
 0x2b5   :  { %v565_v59 = vpop.permute.xlu2 %216 }
 0x2b6   :  { %289 = vst.msk [vmem:[%s634_s9] sm:$0xff] %vm54_vm0, %v565_v59  ;;  %v223_v60 = vsel %vm54_vm0, %v565_v59, %v221_v58 }
 0x2b7   :  { %380 = vmatmul.msk.f32.vlgmr.msra.gmra.mxu3 %vm224_vm7, %v223_v60 }
 0x2bd   :  { %v270_v16 = vpop.permute.xlu2 %269 }
 0x33a   :  { %v245_v62 = vpop.f32.mrf.mxu3 }
 0x33b   :  { %v246_v63 = vadd.f32 %v394_v61, %v245_v62 }
 0x33d   :  { %404 = vtanh.f32 %v246_v63  ;;  %v381_v1 = vmul.f32 -1.442695, %v246_v63 }
 0x33f   :  { %406 = vpow2.f32 %v381_v1 }
 0x343   :  { %v405_v0 = vpop.eup %404 }
 0x344   :  { %274 = vrot.lane.b32.xlu1 %v405_v0, %s448_s16 }
 0x345   :  { %v407_v2 = vpop.eup %406 }
 0x346   :  { %v251_v3 = vadd.f32 1.0, %v407_v2 }
 0x348   :  { %408 = vrcp.f32 %v251_v3  ;;  %v263_v9 = vand.u32 2147483648, %v251_v3  ;;  %vm257_vm9 = vweird.f32 %v251_v3  ;;  %v261_v10 = vand.u32 2147483647, %v251_v3 }
 0x34a   :  { %v264_v12 = vor.u32 1.1754944e-38, %v263_v9  ;;  %vm262_vm11 = vcmp.eq.f32.partialorder %v261_v10, 8.507059e+37 }
 0x34e   :  { %v409_v4 = vpop.eup %408 }
 0x34f   :  { %v253_v5 = vmul.f32 %v409_v4, %v251_v3  ;;  %vm258_vm8 = vweird.f32 %v409_v4 }
 0x350   :  { %vm259_vm10 = vmor %vm257_vm9, %vm258_vm8 }
 0x351   :  { %v254_v6 = vsub.f32 1.0, %v253_v5 }
 0x353   :  { %v255_v7 = vmul.f32 %v409_v4, %v254_v6 }
 0x355   :  { %v256_v8 = vadd.f32 %v409_v4, %v255_v7 }
 0x357   :  { %v260_v11 = vsel %vm259_vm10, %v409_v4, %v256_v8 }
 0x358   :  { %v265_v13 = vsel %vm262_vm11, %v264_v12, %v260_v11 }
 0x359   :  { %v272_v17 = vmul.f32 %v270_v16, %v265_v13 }
 0x3b6   :  { %v275_v14 = vpop.permute.xlu1 %274 }
 0x3b7   :  { %v277_v15 = vmul.f32 %v275_v14, %v265_v13 }
 0x3b9   :  { %279 = vrot.lane.b32.xlu0 %v277_v15, %s446_s13 }
 0x3c1   :  { %291 = vrot.lane.b32.xlu0 %v208_v44, %s449_s7 }
 0x42b   :  { %v280_v18 = vpop.permute.xlu0 %279 }
 0x42c   :  { %v282_v19 = vadd.f32 %v280_v18, %v272_v17 }
 0x42e   :  { %410 = vtanh.f32 %v282_v19 }
 0x433   :  { %v292_v20 = vpop.permute.xlu0 %291 }
 0x434   :  { %v411_v21 = vpop.eup %410  ;;  %294 = vst.msk [vmem:[%s635_s10] sm:$0xff] %vm54_vm0, %v292_v20 }
 0x435   :  { %285 = vrot.lane.b32.xlu1 %v411_v21, %s448_s16 }
 0x4a7   :  { %v286_v29 = vpop.permute.xlu1 %285 }
 0x4a8   :  { %v288_v30 = vmul.f32 %v286_v29, %v265_v13 }
 0x4aa   :  { %296 = vrot.lane.b32.xlu1 %v288_v30, %s446_s13  ;;  %308 = vrot.lane.b32.xlu2 %v288_v30, %s448_s16 }
 0x4b2   :  { %301 = vrot.lane.b32.xlu2 %v282_v19, %s449_s7 }
 0x504   :  { %v309_v32 = vpop.permute.xlu2 %308 }
 0x505   :  { %v311_v33 = vsel %vm54_vm0, %v565_v59, %v309_v32 }
 0x506   :  { %384 = vmatmul.msk.f32.vlgmr.msra.gmra.mxu0 %vm224_vm7, %v311_v33 }
 0x50c   :  { %v302_v34 = vpop.permute.xlu2 %301 }
 0x50d   :  { %383 = vst.msk [vmem:[%s635_s10 + $0x8] sm:$0xff] %vm54_vm0, %v302_v34 }
 0x51c   :  { %v297_v35 = vpop.permute.xlu1 %296 }
 0x51d   :  { %382 = vst.msk [vmem:[%s634_s9 + $0x8] sm:$0xff] %vm54_vm0, %v297_v35 }
 0x583   :  { %v336_v37 = vpop.f32.mrf.mxu0 }
 0x584   :  { %v337_v38 = vadd.f32 %v395_v36, %v336_v37 }
 0x586   :  { %v342_v39 = vand.u32 2147483647, %v337_v38  ;;  %v339_v50 = vmax.f32 %v337_v38, 0.0  ;;  %vm340_vm14 = vcmp.ne.f32.partialorder %v337_v38, %v337_v38 }
 0x588   :  { %v343_v40 = vsub.f32 0.0, %v342_v39 }
 0x58a   :  { %v344_v41 = vmul.f32 1.442695, %v343_v40 }
 0x58c   :  { %412 = vpow2.f32 %v344_v41 }
 0x592   :  { %v413_v42 = vpop.eup %412 }
 0x593   :  { %v346_v43 = vadd.f32 1.0, %v413_v42  ;;  %v349_v44 = vmul.f32 -0.5, %v413_v42  ;;  %v352_v46 = vand.u32 2147483647, %v413_v42 }
 0x595   :  { %414 = vlog2.f32 %v346_v43  ;;  %v350_v45 = vadd.f32 1.0, %v349_v44  ;;  %vm353_vm12 = vcmp.lt.f32.partialorder %v352_v46, 0.0004427343 }
 0x597   :  { %v351_v49 = vmul.f32 %v413_v42, %v350_v45 }
 0x59b   :  { %v415_v47 = vpop.eup %414 }
 0x59c   :  { %v348_v48 = vmul.f32 0.6931472, %v415_v47 }
 0x59e   :  { %v354_v51 = vsel %vm353_vm12, %v351_v49, %v348_v48 }
 0x59f   :  { %v355_v52 = vadd.f32 %v354_v51, %v339_v50 }
 0x5a1   :  { %v356_v53 = vsel %vm340_vm14, %v337_v38, %v355_v52 }
 0x5a2   :  { %v358_v54 = vsel %vm357_vm13, %v337_v38, %v356_v53 }
 0x5a3   :  { %360 = vst.msk [vmem:[%s633_s8] sm:$0xff] %vm359_vm15, %v358_v54 }
 0x5a4   :  { %373 = vsyncpa [#allocation4], 1 }

</bundles_post_ra>
